<compile_context>
chip_gen: v5e
topology: v5e:2x2
jax: 0.10.0
libtpu: 0.0.40
codegen_flags: <defaults>
</compile_context>

<pallas_src>
import functools
import math

import jax
import jax.numpy as jnp
from jax import lax
from jax.experimental import pallas as pl
from jax.experimental.pallas import tpu as pltpu

TGT_VOCAB_SIZE = 9      # len(tgt_vocab)
D_MODEL = 512           # nn.Embedding(tgt_vocab_size, 512), PositionalEncoding(512)


def _decoder_embed_kernel(ids_ref, emb_ref, pe_ref, out_ref, *, batch):
    """Embedding gather (one-hot MXU matmul over padded vocab) + positional-encoding add.

    ids_ref: (BT, 1)     int32  VMEM   token ids, rows ordered b*T + t
    emb_ref: (V_pad, D)  f32    VMEM   zero-padded embedding table (V_pad multiple of 128)
    pe_ref:  (T, D)      f32    VMEM   positional encodings for one sequence
    out_ref: (BT, D)     f32    VMEM   lane-dense 2-D output (D = 512 = 4 * 128)
    """
    R, _ = out_ref.shape                 # R = B * T
    V_pad = emb_ref.shape[0]

    ids = ids_ref[...]                                              # (R, 1) int32
    iota_v = lax.broadcasted_iota(jnp.int32, (R, V_pad), 1)         # (R, V_pad)
    onehot = (ids == iota_v).astype(jnp.float32)                    # lane-aligned compare

    # Exact gather as one-hot @ table on the MXU: single M=BT matmul, K = V_pad = 128.
    gathered = jnp.dot(onehot, emb_ref[...],
                       preferred_element_type=jnp.float32)          # (R, D)

    # Replicate the (T, D) PE block across the batch inside VMEM (no HBM tile in the wrapper).
    pe = pe_ref[...]                                                # (T, D)
    pe_rows = pe if batch == 1 else jnp.concatenate([pe] * batch, axis=0)   # (R, D)

    out_ref[...] = (gathered + pe_rows).astype(out_ref.dtype)       # one unmasked lane-dense store


def decoder_embed(target_ids, emb_table, pe_table):
    """target_ids: (B, T) int; emb_table: (V, D) f32; pe_table: (T, D) f32 -> (B, T, D) f32."""
    B, T = target_ids.shape
    V, D = emb_table.shape
    BT = B * T

    # Zero-pad the vocab axis to a multiple of 128 (aligned MXU K, no masked vreg compares).
    V_pad = max(128, -(-V // 128) * 128)
    if V_pad != V:
        emb_table = jnp.zeros((V_pad, D), emb_table.dtype).at[:V, :].set(emb_table)

    ids2d = target_ids.reshape(BT, 1).astype(jnp.int32)             # glue reshape only

    out_flat = pl.pallas_call(
        functools.partial(_decoder_embed_kernel, batch=B),
        out_shape=jax.ShapeDtypeStruct((BT, D), jnp.float32),
        # No grid: one block covers the whole problem; each input/output is a single
        # full-array VMEM block (full-array shapes are exempt from the (8,128) rule).
        in_specs=[
            pl.BlockSpec((BT, 1)),        # token ids
            pl.BlockSpec((V_pad, D)),     # padded embedding table (staged into VMEM once)
            pl.BlockSpec((T, D)),         # positional encodings (staged into VMEM once)
        ],
        out_specs=pl.BlockSpec((BT, D)),
    )(ids2d, emb_table, pe_table)

    # (B, T, D) reshape is free layout plumbing outside the kernel.
    return out_flat.reshape(B, T, D)


def make_positional_encoding(seq_len, d_model):
    """Standard PyTorch-tutorial PositionalEncoding table (T, D)."""
    position = jnp.arange(seq_len, dtype=jnp.float32)[:, None]                      # (T, 1)
    div_term = jnp.exp(jnp.arange(0, d_model, 2, dtype=jnp.float32)
                       * (-math.log(10000.0) / d_model))                            # (D/2,)
    pe = jnp.zeros((seq_len, d_model), dtype=jnp.float32)
    pe = pe.at[:, 0::2].set(jnp.sin(position * div_term))
    pe = pe.at[:, 1::2].set(jnp.cos(position * div_term))
    return pe


def get_model_forward(source, target, emb_table, pe_table):
    # `source` (and nn.Transformer) are unused by the PyTorch forward; kept for signature parity.
    del source
    dec_outputs = decoder_embed(target, emb_table, pe_table)
    # TODO(synk): PyTorch forward has no `return`; we return the computed dec_outputs instead.
    return dec_outputs


if __name__ == "__main__":
    key = jax.random.PRNGKey(0)
    k_emb, k_tgt, k_src = jax.random.split(key, 3)

    B, T = 2, 8                                                     # small batch / target seq
    V, D = TGT_VOCAB_SIZE, D_MODEL

    # nn.Embedding default init ~ N(0, 1)
    emb_table = jax.random.normal(k_emb, (V, D), dtype=jnp.float32)
    target = jax.random.randint(k_tgt, (B, T), 0, V, dtype=jnp.int32)
    source = jax.random.randint(k_src, (B, T), 0, V, dtype=jnp.int32)  # unused by forward
    pe_table = make_positional_encoding(T, D)

    out = get_model_forward(source, target, emb_table, pe_table)
    out = jax.block_until_ready(out)

    # Pure-JAX reference: emb[target] + pe[position]  (eval-mode PositionalEncoding).
    ref = emb_table[target] + pe_table[None, :, :]
    assert out.shape == (B, T, D) and out.dtype == jnp.float32
    assert jnp.allclose(out, ref, atol=1e-5), "mismatch vs reference"

    print("KERNEL_OK")
</pallas_src>

<mosaic_0001>
module attributes {stable_mosaic.version = 11 : i64} {
  func.func @_decoder_embed_kernel(%arg0: memref<16x1xi32, #tpu.memory_space<vmem>>, %arg1: memref<128x512xf32, #tpu.memory_space<vmem>>, %arg2: memref<8x512xf32, #tpu.memory_space<vmem>>, %arg3: memref<16x512xf32, #tpu.memory_space<vmem>>) attributes {dimension_semantics = [], scalar_prefetch = 0 : i64, scratch_operands = 0 : i64, tpu.core_type = #tpu.core_type<tc>} {
    %c0 = arith.constant 0 : index
    %c0_0 = arith.constant 0 : index
    %0 = vector.load %arg0[%c0, %c0_0] : memref<16x1xi32, #tpu.memory_space<vmem>>, vector<16x1xi32>
    %1 = tpu.iota {dimensions = array<i32: 1>} : vector<16x128xi32>
    %2 = vector.broadcast %0 : vector<16x1xi32> to vector<16x128xi32>
    %3 = arith.cmpi eq, %2, %1 : vector<16x128xi32>
    %4 = arith.extui %3 : vector<16x128xi1> to vector<16x128xi32>
    %5 = arith.sitofp %4 : vector<16x128xi32> to vector<16x128xf32>
    %c0_1 = arith.constant 0 : index
    %c0_2 = arith.constant 0 : index
    %6 = vector.load %arg1[%c0_1, %c0_2] : memref<128x512xf32, #tpu.memory_space<vmem>>, vector<128x512xf32>
    %cst = arith.constant dense<0.000000e+00> : vector<16x512xf32>
    %7 = tpu.matmul %5, %6, %cst {dimension_numbers = #tpu.dot_dimension_numbers<[1], [0], [0], [1], [0, 0, 1, 1], [], []>} : vector<16x128xf32>, vector<128x512xf32>, vector<16x512xf32> -> vector<16x512xf32>
    %c0_3 = arith.constant 0 : index
    %c0_4 = arith.constant 0 : index
    %8 = vector.load %arg2[%c0_3, %c0_4] : memref<8x512xf32, #tpu.memory_space<vmem>>, vector<8x512xf32>
    %9 = tpu.concatenate %8, %8 in 0 : vector<8x512xf32>, vector<8x512xf32> -> vector<16x512xf32>
    %10 = arith.addf %7, %9 : vector<16x512xf32>
    %c0_5 = arith.constant 0 : index
    %c0_6 = arith.constant 0 : index
    %11 = vector.load %arg3[%c0_5, %c0_6] : memref<16x512xf32, #tpu.memory_space<vmem>>, vector<16x512xf32>
    tpu.vector_store %arg3[%c0_5, %c0_6], %10 {strides = array<i32>} : memref<16x512xf32, #tpu.memory_space<vmem>>, vector<16x512xf32>,
    return
  }
}

</mosaic_0001>

<bundles_post_ra>
// kernel: tpu_custom_call.1
= control target key start
LH: loop header
LB: loop body
LE: loop exit
PB: predicated region body
PF: predicated region fallthrough
CT: control target
= control target key end

     0   :  { %8 = vsyncpa [#allocation3], 0  ;;  %s393_s0 = inlined_call_operand.vmem [shape: s32[16,1], index: 0, kind: input, shape index: {}]   ;;  %s394_s1 = inlined_call_operand.hbm [shape: f32[128,512], index: 1, kind: input, shape index: {}]   ;;  %s395_s2 = inlined_call_operand.hbm [shape: f32[8,512], index: 2, kind: input, shape index: {}]   ;;  %s396_s3 = inlined_call_operand.hbm [shape: f32[16,512], index: 3, kind: output, shape index: {}]  }
   0x1   :  { %9 = vsyncpa [#allocation6], 0 }
   0x2   :  { %10 = vsyncpa [#allocation4], 0  ;;  %s17_s14 = sshll.u32 %s394_s1, 4  ;;  %s345_s15 = smov [#allocation2]   ;;  %s18_s14 = int_to_ptr.hbm [resolvable:$true] %s17_s14 }
   0x3   :  { %s19_s16 = sshll.u32 %s345_s15, 4  ;;  %s31_s19 = sshll.u32 %s395_s2, 4  ;;  %s20_s16 = int_to_ptr.vmem [resolvable:$true] %s19_s16  ;;  %s32_s19 = int_to_ptr.hbm [resolvable:$true] %s31_s19 }
   0x4   :  { %s346_s20 = smov 512   ;;  %s347_s21 = smov 32  }
   0x5   :  { %25 = dma.hbm_to_vmem [thread:$0]  %s18_s14, 8192, %s20_s16, [#allocation3], %s346_s20, %s346_s20, %s347_s21  }
   0x6   :  { %s348_s22 = smov [#allocation5]  }
   0x7   :  { %s33_s23 = sshll.u32 %s348_s22, 4  ;;  %s34_s23 = int_to_ptr.vmem [resolvable:$true] %s33_s23 }
   0x8   :  { %36 = dma.hbm_to_vmem [thread:$0]  %s32_s19, 512, %s34_s23, [#allocation6]  }
   0x9   :  { %339 = dma.done.wait [#allocation3], 8192  }
   0xa   :  { %340 = vsyncadd [#allocation3], 4294959104 }
   0xb   :  { %341 = dma.done.wait [#allocation6], 512  }
   0xc   :  { %342 = vsyncadd [#allocation6], 4294966784  ;;  %v349_v0 = vmov 0   ;;  %v45_v1 = vld [vmem:[%s393_s0] sm:$0xff]  ;;  %v122_v3 = vld [vmem:[#allocation2 + $0x1e8] sm:$0xff]  ;;  %s235_s29 = sshll.u32 %s396_s3, 4  ;;  %s236_s29 = int_to_ptr.hbm [resolvable:$true] %s235_s29 }
   0xd   :  { %266 = vset.pattern.permute.xlu0 %v349_v0  ;;  %v121_v2 = vld [vmem:[#allocation2 + $0x1e0] sm:$0xff]  ;;  %v123_v4 = vld [vmem:[#allocation2 + $0x1f0] sm:$0xff]  ;;  %v124_v5 = vld [vmem:[#allocation2 + $0x1f8] sm:$0xff]  ;;  %152 = vmatpush.msra.mxu1 %v122_v3  ;;  %v47_v3 = vlaneseq }
   0xe   :  { %50 = vperm.xlu0 %266, %v45_v1   ;;  %129 = vmatpush.msra.mxu0 %v121_v2  ;;  %v117_v6 = vld [vmem:[#allocation2 + $0x1c0] sm:$0xff]  ;;  %v118_v7 = vld [vmem:[#allocation2 + $0x1c8] sm:$0xff]  ;;  %v119_v8 = vld [vmem:[#allocation2 + $0x1d0] sm:$0xff] }
   0xf   :  { %175 = vmatpush.msra.mxu2 %v123_v4  ;;  %198 = vmatpush.msra.mxu3 %v124_v5  ;;  %v120_v9 = vld [vmem:[#allocation2 + $0x1d8] sm:$0xff]  ;;  %v113_v10 = vld [vmem:[#allocation2 + $0x1a0] sm:$0xff]  ;;  %v114_v11 = vld [vmem:[#allocation2 + $0x1a8] sm:$0xff]  ;;  %v48_v4 = vand.u32 127, %v47_v3 }
  0x10   :  { %130 = vmatpush.msra.mxu0 %v117_v6  ;;  %153 = vmatpush.msra.mxu1 %v118_v7  ;;  %v115_v12 = vld [vmem:[#allocation2 + $0x1b0] sm:$0xff]  ;;  %v116_v13 = vld [vmem:[#allocation2 + $0x1b8] sm:$0xff]  ;;  %v109_v14 = vld [vmem:[#allocation2 + $0x180] sm:$0xff]  ;;  %v350_v6 = vmov 1.0  }
  0x11   :  { %176 = vmatpush.msra.mxu2 %v119_v8  ;;  %199 = vmatpush.msra.mxu3 %v120_v9  ;;  %v110_v15 = vld [vmem:[#allocation2 + $0x188] sm:$0xff]  ;;  %v111_v16 = vld [vmem:[#allocation2 + $0x190] sm:$0xff]  ;;  %v112_v18 = vld [vmem:[#allocation2 + $0x198] sm:$0xff] }
  0x12   :  { %131 = vmatpush.msra.mxu0 %v113_v10  ;;  %v46_v17 = vld [vmem:[%s393_s0 + $0x8] sm:$0xff]  ;;  %154 = vmatpush.msra.mxu1 %v114_v11  ;;  %v105_v19 = vld [vmem:[#allocation2 + $0x160] sm:$0xff]  ;;  %v107_v21 = vld [vmem:[#allocation2 + $0x170] sm:$0xff]  ;;  %s351_s0 = smov [#allocation7]  }
  0x13   :  { %177 = vmatpush.msra.mxu2 %v115_v12  ;;  %200 = vmatpush.msra.mxu3 %v116_v13  ;;  %v106_v20 = vld [vmem:[#allocation2 + $0x168] sm:$0xff]  ;;  %v108_v22 = vld [vmem:[#allocation2 + $0x178] sm:$0xff]  ;;  %v101_v23 = vld [vmem:[#allocation2 + $0x140] sm:$0xff]  ;;  %s233_s26 = sshll.u32 %s351_s0, 4  ;;  %s234_s26 = int_to_ptr.vmem [resolvable:$true] %s233_s26 }
  0x14   :  { %132 = vmatpush.msra.mxu0 %v109_v14  ;;  %155 = vmatpush.msra.mxu1 %v110_v15  ;;  %v102_v24 = vld [vmem:[#allocation2 + $0x148] sm:$0xff]  ;;  %v103_v25 = vld [vmem:[#allocation2 + $0x150] sm:$0xff]  ;;  %v104_v26 = vld [vmem:[#allocation2 + $0x158] sm:$0xff] }
  0x15   :  { %178 = vmatpush.msra.mxu2 %v111_v16  ;;  %201 = vmatpush.msra.mxu3 %v112_v18  ;;  %v97_v27 = vld [vmem:[#allocation2 + $0x120] sm:$0xff]  ;;  %v98_v28 = vld [vmem:[#allocation2 + $0x128] sm:$0xff]  ;;  %v99_v29 = vld [vmem:[#allocation2 + $0x130] sm:$0xff] }
  0x16   :  { %53 = vperm.xlu0 %266, %v46_v17   ;;  %133 = vmatpush.msra.mxu0 %v105_v19  ;;  %v100_v30 = vld [vmem:[#allocation2 + $0x138] sm:$0xff]  ;;  %v93_v31 = vld [vmem:[#allocation2 + $0x100] sm:$0xff]  ;;  %v94_v32 = vld [vmem:[#allocation2 + $0x108] sm:$0xff] }
  0x17   :  { %156 = vmatpush.msra.mxu1 %v106_v20  ;;  %179 = vmatpush.msra.mxu2 %v107_v21  ;;  %v95_v33 = vld [vmem:[#allocation2 + $0x110] sm:$0xff]  ;;  %v96_v34 = vld [vmem:[#allocation2 + $0x118] sm:$0xff]  ;;  %v89_v35 = vld [vmem:[#allocation2 + $0xe0] sm:$0xff] }
  0x18   :  { %202 = vmatpush.msra.mxu3 %v108_v22  ;;  %134 = vmatpush.msra.mxu0 %v101_v23  ;;  %v90_v36 = vld [vmem:[#allocation2 + $0xe8] sm:$0xff]  ;;  %v91_v37 = vld [vmem:[#allocation2 + $0xf0] sm:$0xff]  ;;  %v92_v38 = vld [vmem:[#allocation2 + $0xf8] sm:$0xff] }
  0x19   :  { %157 = vmatpush.msra.mxu1 %v102_v24  ;;  %180 = vmatpush.msra.mxu2 %v103_v25  ;;  %v85_v39 = vld [vmem:[#allocation2 + $0xc0] sm:$0xff]  ;;  %v86_v40 = vld [vmem:[#allocation2 + $0xc8] sm:$0xff]  ;;  %v87_v41 = vld [vmem:[#allocation2 + $0xd0] sm:$0xff] }
  0x1a   :  { %203 = vmatpush.msra.mxu3 %v104_v26  ;;  %135 = vmatpush.msra.mxu0 %v97_v27  ;;  %v88_v42 = vld [vmem:[#allocation2 + $0xd8] sm:$0xff]  ;;  %v81_v43 = vld [vmem:[#allocation2 + $0xa0] sm:$0xff]  ;;  %v82_v44 = vld [vmem:[#allocation2 + $0xa8] sm:$0xff] }
  0x1b   :  { %158 = vmatpush.msra.mxu1 %v98_v28  ;;  %181 = vmatpush.msra.mxu2 %v99_v29  ;;  %v83_v45 = vld [vmem:[#allocation2 + $0xb0] sm:$0xff]  ;;  %v84_v46 = vld [vmem:[#allocation2 + $0xb8] sm:$0xff]  ;;  %v77_v47 = vld [vmem:[#allocation2 + $0x80] sm:$0xff] }
  0x1c   :  { %204 = vmatpush.msra.mxu3 %v100_v30  ;;  %136 = vmatpush.msra.mxu0 %v93_v31  ;;  %v78_v48 = vld [vmem:[#allocation2 + $0x88] sm:$0xff]  ;;  %v79_v49 = vld [vmem:[#allocation2 + $0x90] sm:$0xff]  ;;  %v80_v50 = vld [vmem:[#allocation2 + $0x98] sm:$0xff] }
  0x1d   :  { %159 = vmatpush.msra.mxu1 %v94_v32  ;;  %182 = vmatpush.msra.mxu2 %v95_v33  ;;  %v73_v51 = vld [vmem:[#allocation2 + $0x60] sm:$0xff]  ;;  %v74_v52 = vld [vmem:[#allocation2 + $0x68] sm:$0xff]  ;;  %v75_v53 = vld [vmem:[#allocation2 + $0x70] sm:$0xff] }
  0x1e   :  { %205 = vmatpush.msra.mxu3 %v96_v34  ;;  %137 = vmatpush.msra.mxu0 %v89_v35  ;;  %v76_v54 = vld [vmem:[#allocation2 + $0x78] sm:$0xff]  ;;  %v69_v55 = vld [vmem:[#allocation2 + $0x40] sm:$0xff]  ;;  %v70_v56 = vld [vmem:[#allocation2 + $0x48] sm:$0xff] }
  0x1f   :  { %160 = vmatpush.msra.mxu1 %v90_v36  ;;  %183 = vmatpush.msra.mxu2 %v91_v37  ;;  %v71_v57 = vld [vmem:[#allocation2 + $0x50] sm:$0xff]  ;;  %v72_v58 = vld [vmem:[#allocation2 + $0x58] sm:$0xff]  ;;  %v65_v59 = vld [vmem:[#allocation2 + $0x20] sm:$0xff] }
  0x20   :  { %206 = vmatpush.msra.mxu3 %v92_v38  ;;  %138 = vmatpush.msra.mxu0 %v85_v39  ;;  %v66_v60 = vld [vmem:[#allocation2 + $0x28] sm:$0xff]  ;;  %v67_v61 = vld [vmem:[#allocation2 + $0x30] sm:$0xff]  ;;  %v68_v62 = vld [vmem:[#allocation2 + $0x38] sm:$0xff] }
  0x21   :  { %161 = vmatpush.msra.mxu1 %v86_v40  ;;  %184 = vmatpush.msra.mxu2 %v87_v41  ;;  %v61_v63 = vld [vmem:[#allocation2] sm:$0xff]  ;;  %v62_v0 = vld [vmem:[#allocation2 + $0x8] sm:$0xff]  ;;  %v63_v1 = vld [vmem:[#allocation2 + $0x10] sm:$0xff] }
  0x22   :  { %207 = vmatpush.msra.mxu3 %v88_v42  ;;  %139 = vmatpush.msra.mxu0 %v81_v43  ;;  %v64_v2 = vld [vmem:[#allocation2 + $0x18] sm:$0xff]  ;;  %v125_v8 = vld [vmem:[#allocation5] sm:$0xff]  ;;  %v126_v9 = vld [vmem:[#allocation5 + $0x8] sm:$0xff] }
  0x23   :  { %162 = vmatpush.msra.mxu1 %v82_v44  ;;  %185 = vmatpush.msra.mxu2 %v83_v45  ;;  %v127_v14 = vld [vmem:[#allocation5 + $0x10] sm:$0xff]  ;;  %v128_v15 = vld [vmem:[#allocation5 + $0x18] sm:$0xff] }
  0x24   :  { %208 = vmatpush.msra.mxu3 %v84_v46  ;;  %140 = vmatpush.msra.mxu0 %v77_v47 }
  0x25   :  { %163 = vmatpush.msra.mxu1 %v78_v48  ;;  %186 = vmatpush.msra.mxu2 %v79_v49 }
  0x26   :  { %209 = vmatpush.msra.mxu3 %v80_v50  ;;  %141 = vmatpush.msra.mxu0 %v73_v51 }
  0x27   :  { %164 = vmatpush.msra.mxu1 %v74_v52  ;;  %187 = vmatpush.msra.mxu2 %v75_v53 }
  0x28   :  { %210 = vmatpush.msra.mxu3 %v76_v54  ;;  %142 = vmatpush.msra.mxu0 %v69_v55 }
  0x29   :  { %165 = vmatpush.msra.mxu1 %v70_v56  ;;  %188 = vmatpush.msra.mxu2 %v71_v57 }
  0x2a   :  { %211 = vmatpush.msra.mxu3 %v72_v58  ;;  %143 = vmatpush.msra.mxu0 %v65_v59 }
  0x2b   :  { %166 = vmatpush.msra.mxu1 %v66_v60  ;;  %189 = vmatpush.msra.mxu2 %v67_v61 }
  0x2c   :  { %212 = vmatpush.msra.mxu3 %v68_v62  ;;  %144 = vmatpush.msra.mxu0 %v61_v63 }
  0x2d   :  { %167 = vmatpush.msra.mxu1 %v62_v0  ;;  %190 = vmatpush.msra.mxu2 %v63_v1 }
  0x2e   :  { %213 = vmatpush.msra.mxu3 %v64_v2 }
  0x80   :  { %v51_v5 = vpop.permute.xlu0 %50 }
  0x81   :  { %vm55_vm0 = vcmp.eq.s32.totalorder %v51_v5, %v48_v4 }
  0x82   :  { %251 = vmatmul.msk.f32.vlgmr.msra.gmra.mxu0 %vm55_vm0, %v350_v6  ;;  %253 = vmatmul.msk.f32.vlgmr.msra.gmra.mxu1 %vm55_vm0, %v350_v6 }
  0x83   :  { %255 = vmatmul.msk.f32.vlgmr.msra.gmra.mxu2 %vm55_vm0, %v350_v6  ;;  %257 = vmatmul.msk.f32.vlgmr.msra.gmra.mxu3 %vm55_vm0, %v350_v6 }
  0x88   :  { %v54_v7 = vpop.permute.xlu0 %53 }
  0x89   :  { %vm56_vm1 = vcmp.eq.s32.totalorder %v54_v7, %v48_v4 }
  0x8a   :  { %252 = vmatmul.msk.f32.gmra.mxu0 %vm56_vm1, %v350_v6  ;;  %254 = vmatmul.msk.f32.gmra.mxu1 %vm56_vm1, %v350_v6 }
  0x8b   :  { %256 = vmatmul.msk.f32.gmra.mxu2 %vm56_vm1, %v350_v6  ;;  %258 = vmatmul.msk.f32.gmra.mxu3 %vm56_vm1, %v350_v6 }
  0xff   :  { %v146_v10 = vpop.f32.mrf.mxu0  ;;  %v169_v11 = vpop.f32.mrf.mxu1 }
 0x100   :  { %v147_v12 = vadd.f32 %v146_v10, %v125_v8  ;;  %v170_v13 = vadd.f32 %v169_v11, %v126_v9 }
 0x102   :  { %221 = vst [vmem:[#allocation7] sm:$0xff] %v147_v12 }
 0x103   :  { %222 = vst [vmem:[#allocation7 + $0x8] sm:$0xff] %v170_v13 }
 0x106   :  { %v192_v16 = vpop.f32.mrf.mxu2  ;;  %v215_v17 = vpop.f32.mrf.mxu3 }
 0x107   :  { %v193_v18 = vadd.f32 %v192_v16, %v127_v14  ;;  %v216_v19 = vadd.f32 %v215_v17, %v128_v15  ;;  %v149_v20 = vpop.f32.mrf.mxu0  ;;  %v172_v21 = vpop.f32.mrf.mxu1 }
 0x108   :  { %v150_v22 = vadd.f32 %v149_v20, %v125_v8  ;;  %v173_v23 = vadd.f32 %v172_v21, %v126_v9 }
 0x109   :  { %223 = vst [vmem:[#allocation7 + $0x10] sm:$0xff] %v193_v18 }
 0x10a   :  { %224 = vst [vmem:[#allocation7 + $0x18] sm:$0xff] %v216_v19 }
 0x10b   :  { %225 = vst [vmem:[#allocation7 + $0x20] sm:$0xff] %v150_v22 }
 0x10c   :  { %226 = vst [vmem:[#allocation7 + $0x28] sm:$0xff] %v173_v23 }
 0x10e   :  { %v195_v24 = vpop.f32.mrf.mxu2  ;;  %v218_v25 = vpop.f32.mrf.mxu3 }
 0x10f   :  { %v196_v26 = vadd.f32 %v195_v24, %v127_v14  ;;  %v219_v27 = vadd.f32 %v218_v25, %v128_v15 }
 0x111   :  { %227 = vst [vmem:[#allocation7 + $0x30] sm:$0xff] %v196_v26 }
 0x112   :  { %228 = vst [vmem:[#allocation7 + $0x38] sm:$0xff] %v219_v27 }
 0x113   :  { %241 = dma.vmem_to_hbm [thread:$0]  %s234_s26, 1024, %s236_s29, [#allocation4], %s346_s20, %s346_s20, %s347_s21  }
 0x114   :  { %343 = dma.done.wait [#allocation4], 1024  }
 0x115   :  { %344 = vsyncadd [#allocation4], 4294966272 }
 0x116   :  { %246 = vsyncpa [#allocation3], 1 }
 0x117   :  { %247 = vsyncpa [#allocation6], 1 }
 0x118   :  { %248 = vsyncpa [#allocation4], 1 }

</bundles_post_ra>
